<compile_context>
chip_gen: v6e
topology: v6e:2x2x1
jax: 0.10.0
libtpu: 0.0.40
codegen_flags: <defaults>
</compile_context>

<pallas_src>
import functools

import jax
import jax.numpy as jnp
from jax.experimental import pallas as pl
from jax.experimental.pallas import tpu as pltpu

BN_EPS = 1e-5


def snn_layer_kernel(w_ref, patches_t_ref, params_ref, out_ref):
    # w_ref:         (C, K)   bf16   conv weights, rows = out channels
    # patches_t_ref: (K, M)   bf16   im2col'd input, columns = (N, H, W) positions
    # params_ref:    (C, 2)   f32    [sign(gamma), sign(gamma)*(thresh-beta)/gamma]
    # out_ref:       (C, M)   f32    spikes {0,1} (lane-dense: M = N*H*W on lanes)

    # 1) Conv2d as a matmul on the MXU, bf16 operands, f32 accumulation.
    y = jnp.dot(w_ref[...], patches_t_ref[...],
                preferred_element_type=jnp.float32)                  # (C, M) f32

    params = params_ref[...]                                         # (C, 2)
    sign = params[:, 0:1]                                            # (C, 1)
    ratio = params[:, 1:2]                                           # (C, 1)

    # Fold the sign of gamma into the data once; statistics of ys are the statistics
    # of y up to that sign (var is invariant), so one ">=" covers gamma>0 and gamma<0.
    ys = y * sign                                                    # (C, M)

    # 2) BatchNorm2d batch statistics over (N, H, W) == the lane axis, one pass.
    m = ys.shape[1]
    inv_m = 1.0 / m                                                  # static constant
    s1 = jnp.sum(ys, axis=1, keepdims=True)                          # (C, 1)
    s2 = jnp.sum(ys * ys, axis=1, keepdims=True)                     # (C, 1)
    mean = s1 * inv_m
    var = jnp.maximum(s2 * inv_m - mean * mean, 0.0)                 # biased var, f32
    std = jnp.sqrt(var + BN_EPS)                                     # per-channel only

    # 3)+4) LIF (zero init state => v = BN(conv)) + Fire, as one compare against the
    # pre-BN per-channel threshold:  ys >= mean(ys) + ratio_signed * std.
    # gamma==0 channels: sign=0 => ys==0, std==sqrt(eps)>0, ratio=-/+1 encodes the
    # constant (beta >= thresh) outcome.
    t_c = mean + ratio * std                                         # (C, 1)
    out_ref[...] = (ys >= t_c).astype(out_ref.dtype)


def _im2col_t(x, kh, kw, pad):
    # x: (N, C, H, W) -> (C*kh*kw, N*H*W); rows ordered (C, kh, kw) to match OIHW
    # weight flattening, columns ordered N-major then H then W.
    n, c, h, w = x.shape
    xp = jnp.pad(x, ((0, 0), (0, 0), (pad, pad), (pad, pad)))
    rows = []
    for i in range(kh):
        for j in range(kw):
            rows.append(xp[:, :, i:i + h, j:j + w])                  # (N, C, H, W)
    p = jnp.stack(rows, axis=2)                                      # (N, C, kh*kw, H, W)
    p = p.transpose(1, 2, 0, 3, 4)                                   # (C, kh*kw, N, H, W)
    return p.reshape(c * kh * kw, n * h * w)


@functools.partial(jax.jit, static_argnames=("kh", "kw", "pad"))
def snn_layer_forward(x, weight, bias, gamma, beta, thresh, *, kh=3, kw=3, pad=1):
    """x: (N, C_in, H, W) NCHW.  weight: (C_out, C_in, kh, kw) OIHW.
       Returns spikes (N, C_out, H, W), matching SNNLayer.forward on first call."""
    n, c_in, h, w = x.shape
    c_out = weight.shape[0]
    m = n * h * w
    k = c_in * kh * kw

    # Training-mode BN subtracts the batch mean, which cancels a per-channel conv bias
    # exactly, so the bias never influences the spikes and is not sent to the kernel.
    del bias

    # TODO(synk): for production-sized N*H*W add an M-tiled grid (split BN reduction,
    # "parallel" semantics for v7x's 2 TCs) and fuse im2col in-kernel to avoid the 9x
    # HBM expansion; at M=512 / K=36 / C=8 everything fits one VMEM-resident call.
    patches_t = _im2col_t(x, kh, kw, pad).astype(jnp.bfloat16)       # (K, M)
    w_mat = weight.reshape(c_out, k).astype(jnp.bfloat16)            # (C, K)

    thresh_c = thresh.reshape(c_out).astype(jnp.float32)
    gamma_c = gamma.reshape(c_out).astype(jnp.float32)
    beta_c = beta.reshape(c_out).astype(jnp.float32)
    sign_c = jnp.sign(gamma_c)                                       # +1 / -1 / 0
    safe_gamma = jnp.where(gamma_c != 0.0, gamma_c, 1.0)
    ratio_signed = jnp.where(
        gamma_c != 0.0,
        sign_c * (thresh_c - beta_c) / safe_gamma,
        jnp.where(beta_c >= thresh_c, -1.0, 1.0))
    params = jnp.stack([sign_c, ratio_signed], axis=1)               # (C, 2) f32

    vmem = functools.partial(pl.BlockSpec, memory_space=pltpu.MemorySpace.VMEM)
    spikes_cm = pl.pallas_call(
        snn_layer_kernel,
        out_shape=jax.ShapeDtypeStruct((c_out, m), jnp.float32),
        in_specs=[vmem(), vmem(), vmem()],
        out_specs=vmem(),
    )(w_mat, patches_t, params)

    # (C, M) -> (C, N, H, W) -> (N, C, H, W)
    return spikes_cm.reshape(c_out, n, h, w).transpose(1, 0, 2, 3)


def _reference(x, weight, bias, gamma, beta, thresh):
    # Exact f32 reference of the first-call forward pass.
    y = jax.lax.conv_general_dilated(
        x, weight, window_strides=(1, 1), padding="SAME",
        dimension_numbers=("NCHW", "OIHW", "NCHW"))
    y = y + bias.reshape(1, -1, 1, 1)
    mean = y.mean(axis=(0, 2, 3), keepdims=True)
    var = ((y - mean) ** 2).mean(axis=(0, 2, 3), keepdims=True)
    z = ((y - mean) / jnp.sqrt(var + BN_EPS) * gamma.reshape(1, -1, 1, 1)
         + beta.reshape(1, -1, 1, 1))
    spikes = (z - thresh >= 0.0).astype(jnp.float32)
    return spikes, z


if __name__ == "__main__":
    key = jax.random.PRNGKey(0)
    k_x, k_w, k_b = jax.random.split(key, 3)

    # Small shapes consistent with the module: SNNQConv2d(4 -> 8, 3x3, pad=1)
    N, C_IN, H, W = 2, 4, 16, 16
    C_OUT, KH, KW = 8, 3, 3
    THRESH = 0.5
    BYPASS_IN = False  # TODO(synk): bypass_bn path (bypass_in tensor) not implemented.

    x = jax.random.normal(k_x, (N, C_IN, H, W), jnp.float32)
    weight = jax.random.normal(k_w, (C_OUT, C_IN, KH, KW), jnp.float32) * 0.1
    bias = jax.random.normal(k_b, (C_OUT,), jnp.float32) * 0.1

    # Parameters as in SNNLayer.__init__ (bn=True, thresh=0.5, bypass_in=False):
    thresh = jnp.ones((1, C_OUT, 1, 1), jnp.float32) * THRESH
    gamma = thresh.reshape(-1) / (2 ** 0.5 if BYPASS_IN else 1.0)   # bn.weight <- thresh
    beta = jnp.zeros((C_OUT,), jnp.float32)                         # bn.bias default 0

    out = snn_layer_forward(x, weight, bias, gamma, beta, thresh,
                            kh=KH, kw=KW, pad=1)
    out = jax.block_until_ready(out)

    ref_spikes, z_ref = _reference(x, weight, bias, gamma, beta, thresh)
    assert out.shape == (N, C_OUT, H, W), out.shape
    assert out.dtype == jnp.float32, out.dtype
    assert bool(jnp.all((out == 0.0) | (out == 1.0))), "output not binary"

    # With bf16 matmul operands, only elements whose pre-threshold value sits
    # essentially on the threshold may flip vs the f32 reference; verify any
    # disagreements are confined to that band and are rare.
    mismatch = out != ref_spikes
    n_mismatch = int(jnp.sum(mismatch))
    frac = n_mismatch / out.size
    near_thresh = jnp.abs(z_ref - thresh) < 5e-2
    assert bool(jnp.all(jnp.where(mismatch, near_thresh, True))), \
        "kernel disagrees with reference away from the firing threshold"
    assert frac < 0.02, f"too many threshold-adjacent flips: {frac}"

    print("KERNEL_OK")
</pallas_src>

<mosaic_0001>
module attributes {stable_mosaic.version = 11 : i64} {
  func.func @snn_layer_kernel(%arg0: memref<8x36xbf16, #tpu.memory_space<vmem>>, %arg1: memref<36x512xbf16, #tpu.memory_space<vmem>>, %arg2: memref<8x2xf32, #tpu.memory_space<vmem>>, %arg3: memref<8x512xf32, #tpu.memory_space<vmem>>) attributes {dimension_semantics = [], scalar_prefetch = 0 : i64, scratch_operands = 0 : i64, tpu.core_type = #tpu.core_type<tc>} {
    %c0 = arith.constant 0 : index
    %c0_0 = arith.constant 0 : index
    %0 = vector.load %arg0[%c0, %c0_0] : memref<8x36xbf16, #tpu.memory_space<vmem>>, vector<8x36xbf16>
    %c0_1 = arith.constant 0 : index
    %c0_2 = arith.constant 0 : index
    %1 = vector.load %arg1[%c0_1, %c0_2] : memref<36x512xbf16, #tpu.memory_space<vmem>>, vector<36x512xbf16>
    %cst = arith.constant dense<0.000000e+00> : vector<8x512xf32>
    %2 = tpu.matmul %0, %1, %cst {dimension_numbers = #tpu.dot_dimension_numbers<[1], [0], [0], [1], [0, 0, 1, 1], [], []>} : vector<8x36xbf16>, vector<36x512xbf16>, vector<8x512xf32> -> vector<8x512xf32>
    %c0_3 = arith.constant 0 : index
    %c0_4 = arith.constant 0 : index
    %3 = vector.load %arg2[%c0_3, %c0_4] : memref<8x2xf32, #tpu.memory_space<vmem>>, vector<8x2xf32>
    %4 = vector.extract_strided_slice %3 {offsets = [0, 0], sizes = [8, 1], strides = [1, 1]} : vector<8x2xf32> to vector<8x1xf32>
    %5 = vector.extract_strided_slice %3 {offsets = [0, 1], sizes = [8, 1], strides = [1, 1]} : vector<8x2xf32> to vector<8x1xf32>
    %6 = vector.broadcast %4 : vector<8x1xf32> to vector<8x512xf32>
    %7 = arith.mulf %2, %6 : vector<8x512xf32>
    %cst_5 = arith.constant dense<0.000000e+00> : vector<8xf32>
    %8 = vector.multi_reduction <add>, %7, %cst_5 [1] : vector<8x512xf32> to vector<8xf32>
    %9 = vector.shape_cast %8 : vector<8xf32> to vector<8x1xf32>
    %10 = arith.mulf %7, %7 : vector<8x512xf32>
    %cst_6 = arith.constant dense<0.000000e+00> : vector<8xf32>
    %11 = vector.multi_reduction <add>, %10, %cst_6 [1] : vector<8x512xf32> to vector<8xf32>
    %12 = vector.shape_cast %11 : vector<8xf32> to vector<8x1xf32>
    %cst_7 = arith.constant 0.001953125 : f32
    %13 = vector.broadcast %cst_7 : f32 to vector<8x1xf32>
    %14 = arith.mulf %9, %13 : vector<8x1xf32>
    %cst_8 = arith.constant 0.001953125 : f32
    %15 = vector.broadcast %cst_8 : f32 to vector<8x1xf32>
    %16 = arith.mulf %12, %15 : vector<8x1xf32>
    %17 = arith.mulf %14, %14 : vector<8x1xf32>
    %18 = arith.subf %16, %17 : vector<8x1xf32>
    %cst_9 = arith.constant 0.000000e+00 : f32
    %19 = vector.broadcast %cst_9 : f32 to vector<8x1xf32>
    %20 = arith.maximumf %18, %19 : vector<8x1xf32>
    %cst_10 = arith.constant 9.99999974E-6 : f32
    %21 = vector.broadcast %cst_10 : f32 to vector<8x1xf32>
    %22 = arith.addf %20, %21 : vector<8x1xf32>
    %23 = math.sqrt %22 : vector<8x1xf32>
    %24 = arith.mulf %5, %23 : vector<8x1xf32>
    %25 = arith.addf %14, %24 : vector<8x1xf32>
    %26 = vector.broadcast %25 : vector<8x1xf32> to vector<8x512xf32>
    %27 = arith.cmpf oge, %7, %26 : vector<8x512xf32>
    %28 = arith.extui %27 : vector<8x512xi1> to vector<8x512xi32>
    %29 = arith.sitofp %28 : vector<8x512xi32> to vector<8x512xf32>
    %c0_11 = arith.constant 0 : index
    %c0_12 = arith.constant 0 : index
    %30 = vector.load %arg3[%c0_11, %c0_12] : memref<8x512xf32, #tpu.memory_space<vmem>>, vector<8x512xf32>
    tpu.vector_store %arg3[%c0_11, %c0_12], %29 {strides = array<i32>} : memref<8x512xf32, #tpu.memory_space<vmem>>, vector<8x512xf32>,
    return
  }
}

</mosaic_0001>

<bundles_post_ra>
// kernel: snn_layer_forward.1
= control target key start
LH: loop header
LB: loop body
LE: loop exit
PB: predicated region body
PF: predicated region fallthrough
CT: control target
= control target key end

     0   :  { %vm80_vm0 = vcmask 1041408   ;;  %v283_v2 = vmov 0   ;;  %vm76_vm1 = vcmask 293888   ;;  %v284_v42 = vmov 1   ;;  %s354_s1 = inlined_call_operand.vmem [shape: bf16[36,512], index: 1, kind: input, shape index: {}]   ;;  %s355_s2 = inlined_call_operand.vmem [shape: f32[8,2], index: 2, kind: input, shape index: {}]   ;;  %s356_s0 = inlined_call_operand.vmem [shape: bf16[8,36], index: 0, kind: input, shape index: {}]   ;;  %s357_s3 = inlined_call_operand.vmem [shape: f32[8,512], index: 3, kind: output, shape index: {}]  }
   0x1   :  { %v24_v0 = vld [vmem:[%s354_s1 + $0x40] sm:$0x33]  ;;  %v25_v1 = vld [vmem:[%s354_s1 + $0x48] sm:$0x33]  ;;  %125 = vmatprep.mubr.bf16.mxu0 %v283_v2  ;;  %166 = vmatprep.mubr.bf16.mxu1 %v283_v2  ;;  %v285_v59 = vmov 0.0  }
   0x2   :  { %v248_v3 = vcombine.high %v24_v0, %v24_v0  ;;  %v250_v4 = vcombine.high %v25_v1, %v25_v1  ;;  %v247_v5 = vcombine.low %v24_v0, %v24_v0  ;;  %v249_v6 = vcombine.low %v25_v1, %v25_v1  ;;  %v269_v7 = vld [vmem:[%s354_s1 + $0x24] ss:$16 sps:$4 sm:$0xff]   ;;  %262 = vset.pattern.permute.xlu0 %v283_v2  ;;  %v271_v8 = vld [vmem:[%s354_s1 + $0x2c] ss:$16 sps:$4 sm:$0xff]   ;;  %v273_v11 = vld [vmem:[%s354_s1 + $0x20] ss:$16 sps:$4 sm:$0xff]  }
   0x3   :  { %v274_v12 = vld [vmem:[%s354_s1 + $0x28] ss:$16 sps:$4 sm:$0xff]   ;;  %v275_v13 = vld [vmem:[%s354_s1 + $0x4] ss:$16 sps:$4 sm:$0xff]   ;;  %v277_v14 = vld [vmem:[%s354_s1 + $0xc] ss:$16 sps:$4 sm:$0xff]   ;;  %263 = vset.pattern.permute.xlu1 %v284_v42 }
   0x4   :  { %251 = vmatprep.subr.msk.bf16.mxu0 %vm80_vm0, %v248_v3  ;;  %253 = vmatprep.subr.msk.bf16.mxu1 %vm80_vm0, %v250_v4  ;;  %v82_v9 = vsel %vm80_vm0, %v247_v5, 0  ;;  %v88_v10 = vsel %vm80_vm0, %v249_v6, 0  ;;  %v175_v15 = vld [vmem:[%s355_s2] sm:$0xff]  ;;  %v280_v17 = vld [vmem:[%s354_s1 + $0x8] ss:$16 sps:$4 sm:$0xff]  }
   0x5   :  { %104 = vmatpush1.bf16.msra.mxu0 %v82_v9  ;;  %145 = vmatpush1.bf16.msra.mxu1 %v88_v10  ;;  %v279_v16 = vld [vmem:[%s354_s1] ss:$16 sps:$4 sm:$0xff]  }
   0x6   :  { %105 = vmatprep.subr.bf16.mxu0 %v269_v7  ;;  %146 = vmatprep.subr.bf16.mxu1 %v271_v8  ;;  %v15_v18 = vld [vmem:[%s356_s0] sm:$0xf] }
   0x7   :  { %178 = vperm.xlu0 %262, %v175_v15  }
   0x9   :  { %106 = vmatpush1.bf16.msra.mxu0 %v273_v11  ;;  %147 = vmatpush1.bf16.msra.mxu1 %v274_v12 }
   0xa   :  { %107 = vmatprep.subr.bf16.mxu0 %v275_v13  ;;  %148 = vmatprep.subr.bf16.mxu1 %v277_v14 }
   0xb   :  { %264 = vset.pattern.permute.xlu0 %v284_v42 }
   0xd   :  { %108 = vmatpush1.bf16.msra.mxu0 %v279_v16  ;;  %149 = vmatpush1.bf16.msra.mxu1 %v280_v17 }
  0x10   :  { %252 = vmatmul.mubr.msk.bf16.vlgmr.msra.gmra.mxu0 %vm76_vm1, %v15_v18  ;;  %254 = vmatmul.mubr.msk.bf16.vlgmr.msra.gmra.mxu1 %vm76_vm1, %v15_v18 }
  0x82   :  { %v179_v19 = vpop.permute.xlu0 %178 }
  0xd0   :  { %v127_v20 = vpop.f32.mrf.mxu0  ;;  %v168_v21 = vpop.f32.mrf.mxu1 }
  0xd1   :  { %v181_v22 = vmul.f32 %v179_v19, %v127_v20  ;;  %v183_v25 = vmul.f32 %v179_v19, %v168_v21 }
  0xd2   :  { %v129_v23 = vpop.f32.mrf.mxu0  ;;  %v170_v24 = vpop.f32.mrf.mxu1 }
  0xd3   :  { %v182_v26 = vmul.f32 %v179_v19, %v129_v23  ;;  %v190_v29 = vmul.f32 %v181_v22, %v181_v22  ;;  %v184_v32 = vmul.f32 %v179_v19, %v170_v24  ;;  %v192_v36 = vmul.f32 %v183_v25, %v183_v25 }
  0xd4   :  { %v131_v27 = vpop.f32.mrf.mxu0  ;;  %v172_v28 = vpop.f32.mrf.mxu1 }
  0xd5   :  { %v185_v30 = vadd.f32 %v182_v26, %v181_v22  ;;  %v191_v31 = vmul.f32 %v182_v26, %v182_v26  ;;  %v193_v39 = vmul.f32 %v184_v32, %v184_v32 }
  0xd6   :  { %v132_v33 = vpop.f32.mrf.mxu0  ;;  %v173_v34 = vpop.f32.mrf.mxu1 }
  0xd7   :  { %v186_v35 = vadd.f32 %v185_v30, %v183_v25  ;;  %v194_v37 = vadd.f32 %v191_v31, %v190_v29 }
  0xd9   :  { %v187_v38 = vadd.f32 %v186_v35, %v184_v32  ;;  %v195_v40 = vadd.f32 %v194_v37, %v192_v36 }
  0xdb   :  { %188 = vadd.xlane.f32.xlu0 %v187_v38  ;;  %v196_v41 = vadd.f32 %v195_v40, %v193_v39 }
  0xdd   :  { %197 = vadd.xlane.f32.xlu1 %v196_v41 }
 0x164   :  { %v189_v43 = vpop.xlane.xlu0 %188 }
 0x165   :  { %v199_v44 = vmul.f32 0.001953125, %v189_v43 }
 0x166   :  { %v198_v45 = vpop.xlane.xlu1 %197 }
 0x167   :  { %v201_v46 = vmul.f32 %v199_v44, %v199_v44  ;;  %v200_v47 = vmul.f32 0.001953125, %v198_v45 }
 0x169   :  { %v202_v48 = vsub.f32 %v200_v47, %v201_v46 }
 0x16b   :  { %v203_v49 = vmax.f32 %v202_v48, 0.0 }
 0x16d   :  { %v204_v50 = vadd.f32 1e-05, %v203_v49 }
 0x16f   :  { %281 = vrsqrt.f32 %v204_v50  ;;  %vm207_vm2 = vcmp.eq.f32.partialorder %v204_v50, inf  ;;  %v210_v53 = vand.u32 2147483648, %v204_v50  ;;  %vm209_vm3 = vcmp.eq.f32.partialorder %v204_v50, 0.0 }
 0x17c   :  { %v282_v51 = vpop.eup %281 }
 0x17d   :  { %v206_v52 = vmul.f32 %v282_v51, %v204_v50 }
 0x17f   :  { %v208_v54 = vsel %vm207_vm2, %v204_v50, %v206_v52 }
 0x180   :  { %v211_v55 = vsel %vm209_vm3, %v210_v53, %v208_v54 }
 0x181   :  { %v212_v56 = vmul.f32 %v211_v55, %v175_v15 }
 0x183   :  { %v213_v57 = vadd.f32 %v212_v56, %v199_v44 }
 0x185   :  { %216 = vperm.xlu1 %263, %v213_v57  }
 0x200   :  { %v217_v58 = vpop.permute.xlu1 %216 }
 0x201   :  { %vm219_vm4 = vcmp.ge.f32.partialorder %v181_v22, %v217_v58  ;;  %vm220_vm5 = vcmp.ge.f32.partialorder %v182_v26, %v217_v58  ;;  %vm221_vm6 = vcmp.ge.f32.partialorder %v183_v25, %v217_v58  ;;  %vm222_vm7 = vcmp.ge.f32.partialorder %v184_v32, %v217_v58 }
 0x202   :  { %v255_v60 = vsel %vm219_vm4, 1.0, %v285_v59  ;;  %v256_v61 = vsel %vm220_vm5, 1.0, %v285_v59  ;;  %v257_v62 = vsel %vm221_vm6, 1.0, %v285_v59  ;;  %v258_v63 = vsel %vm222_vm7, 1.0, %v285_v59 }
 0x203   :  { %231 = vst [vmem:[%s357_s3] sm:$0xff] %v255_v60  ;;  %232 = vst [vmem:[%s357_s3 + $0x8] sm:$0xff] %v256_v61 }
 0x204   :  { %233 = vst [vmem:[%s357_s3 + $0x10] sm:$0xff] %v257_v62  ;;  %234 = vst [vmem:[%s357_s3 + $0x18] sm:$0xff] %v258_v63 }

</bundles_post_ra>
